<compile_context>
chip_gen: v7x
topology: tpu7x:2x2x1
jax: 0.10.0
libtpu: 0.0.40
codegen_flags: <defaults>
</compile_context>

<pallas_src>
import functools

import jax
import jax.numpy as jnp
from jax.experimental import pallas as pl
from jax.experimental.pallas import tpu as pltpu


def _round_up(x, m):
    return (x + m - 1) // m * m


def gcn_kernel(x_ref, adj_ref, emb_ref, w_ref, out_ref):
    # x_ref:   (BN, 1)       int32  dep-tag indices (flattened over batch)
    # adj_ref: (BN, BN)      f32    block-diagonal adjacency
    # emb_ref: (nfeat_p, E)  f32    vocab rows zero-padded to 128
    # w_ref:   (E, V)        f32
    # out_ref: (BN, V)       f32
    BN = x_ref.shape[0]
    nfeat_p = emb_ref.shape[0]

    # Fused embedding lookup: one-hot(x) @ emb_table (gather as a single MXU matmul).
    ids = x_ref[...]                                                  # (BN, 1)
    iota = jax.lax.broadcasted_iota(jnp.int32, (BN, nfeat_p), 1)      # (BN, 128)
    onehot = (iota == ids).astype(jnp.float32)                        # (BN, 128)
    dep = jnp.dot(onehot, emb_ref[...],
                  preferred_element_type=jnp.float32)                 # (BN, E)

    adj = adj_ref[...]                                                # (BN, BN)

    # h1 = blkdiag(adj) @ dep ; ReLU
    act = jnp.maximum(
        jnp.dot(adj, dep, preferred_element_type=jnp.float32), 0.0)   # (BN, E)

    # Reassociated: h2 = blkdiag(adj) @ act, then the single wide matmul h2 @ W.
    h2 = jnp.dot(adj, act, preferred_element_type=jnp.float32)        # (BN, E)
    out = jnp.dot(h2, w_ref[...], preferred_element_type=jnp.float32)  # (BN, V)

    out_ref[...] = out.astype(out_ref.dtype)


def pad_gcn_params(emb_table, weight):
    """One-time (model-init) parameter preparation: pad vocab rows to 128 lanes."""
    nfeat, E = emb_table.shape
    nfeat_p = _round_up(max(nfeat, 1), 128)
    emb_p = jnp.zeros((nfeat_p, E), jnp.float32).at[:nfeat, :].set(
        emb_table.astype(jnp.float32))
    return emb_p, weight.astype(jnp.float32)


@jax.jit
def gcn_forward(x, adj, emb_p, weight):
    """Pallas GCN forward: adj @ relu(adj @ emb_table[x]) @ weight."""
    B, N = x.shape
    V = weight.shape[1]
    BN = B * N

    x_flat = x.reshape(BN, 1).astype(jnp.int32)
    adj = adj.astype(jnp.float32)

    # Block-diagonal adjacency: blk[(b,i), (c,j)] = adj[b,i,j] if b == c else 0.
    eye = jnp.eye(B, dtype=jnp.float32)
    adj_blk = jnp.einsum("bij,bc->bicj", adj, eye).reshape(BN, BN)

    out = pl.pallas_call(
        gcn_kernel,
        out_shape=jax.ShapeDtypeStruct((BN, V), jnp.float32),
        # Single invocation (no grid): everything fits comfortably in VMEM.
        in_specs=[
            pl.BlockSpec(memory_space=pltpu.MemorySpace.VMEM),  # x indices
            pl.BlockSpec(memory_space=pltpu.MemorySpace.VMEM),  # block-diag adj
            pl.BlockSpec(memory_space=pltpu.MemorySpace.VMEM),  # padded emb table
            pl.BlockSpec(memory_space=pltpu.MemorySpace.VMEM),  # weight
        ],
        out_specs=pl.BlockSpec(memory_space=pltpu.MemorySpace.VMEM),
    )(x_flat, adj_blk, emb_p, weight)

    return out.reshape(B, N, V)


if __name__ == "__main__":
    # Module-consistent small shapes:
    #   nfeat (dep-tag vocab) = 20, emb_dim = 32, nvocab = 16, sent_len N = 8, batch B = 2
    B, N = 2, 8
    nfeat, emb_dim, nvocab = 20, 32, 16

    key = jax.random.PRNGKey(0)
    k_x, k_adj, k_emb, k_w = jax.random.split(key, 4)

    # Inputs
    x = jax.random.randint(k_x, (B, N), 0, nfeat, dtype=jnp.int32)
    adj = jax.random.uniform(k_adj, (B, N, N), dtype=jnp.float32)

    # Parameters (mirroring the PyTorch module's init shapes; gc1 has bias=False)
    emb_table = jax.random.normal(k_emb, (nfeat, emb_dim), dtype=jnp.float32)
    stdv = 1.0 / jnp.sqrt(jnp.float32(nvocab))
    weight = jax.random.uniform(
        k_w, (emb_dim, nvocab), dtype=jnp.float32, minval=-stdv, maxval=stdv
    )

    # One-time param padding (hoisted out of the per-call path).
    emb_p, weight_f32 = pad_gcn_params(emb_table, weight)

    # Pallas kernel (embedding gather fused inside; whole forward is one jit).
    y = gcn_forward(x, adj, emb_p, weight_f32)
    y = jax.block_until_ready(y)

    # Pure-JAX reference for correctness (original association order).
    dep_matrix = emb_table[x]                               # (B, N, E)
    h1 = jnp.einsum("bij,bjd->bid", adj, dep_matrix)
    act = jnp.maximum(h1, 0.0)
    support = jnp.einsum("bid,dv->biv", act, weight)
    y_ref = jnp.einsum("bij,bjv->biv", adj, support)

    assert y.shape == (B, N, nvocab)
    # Matmul reassociation in the kernel changes rounding at the ~1e-6 level.
    assert jnp.allclose(y, y_ref, atol=1e-4, rtol=1e-4), "mismatch vs reference"

    print("KERNEL_OK")
</pallas_src>

<mosaic_0001>
module attributes {stable_mosaic.version = 11 : i64} {
  func.func @gcn_kernel(%arg0: memref<16x1xi32, #tpu.memory_space<vmem>>, %arg1: memref<16x16xf32, #tpu.memory_space<vmem>>, %arg2: memref<128x32xf32, #tpu.memory_space<vmem>>, %arg3: memref<32x16xf32, #tpu.memory_space<vmem>>, %arg4: memref<16x16xf32, #tpu.memory_space<vmem>>) attributes {dimension_semantics = [], scalar_prefetch = 0 : i64, scratch_operands = 0 : i64, tpu.core_type = #tpu.core_type<tc>} {
    %c0 = arith.constant 0 : index
    %c0_0 = arith.constant 0 : index
    %0 = vector.load %arg0[%c0, %c0_0] : memref<16x1xi32, #tpu.memory_space<vmem>>, vector<16x1xi32>
    %1 = tpu.iota {dimensions = array<i32: 1>} : vector<16x128xi32>
    %2 = vector.broadcast %0 : vector<16x1xi32> to vector<16x128xi32>
    %3 = arith.cmpi eq, %1, %2 : vector<16x128xi32>
    %4 = arith.extui %3 : vector<16x128xi1> to vector<16x128xi32>
    %5 = arith.sitofp %4 : vector<16x128xi32> to vector<16x128xf32>
    %c0_1 = arith.constant 0 : index
    %c0_2 = arith.constant 0 : index
    %6 = vector.load %arg2[%c0_1, %c0_2] : memref<128x32xf32, #tpu.memory_space<vmem>>, vector<128x32xf32>
    %cst = arith.constant dense<0.000000e+00> : vector<16x32xf32>
    %7 = tpu.matmul %5, %6, %cst {dimension_numbers = #tpu.dot_dimension_numbers<[1], [0], [0], [1], [0, 0, 1, 1], [], []>} : vector<16x128xf32>, vector<128x32xf32>, vector<16x32xf32> -> vector<16x32xf32>
    %c0_3 = arith.constant 0 : index
    %c0_4 = arith.constant 0 : index
    %8 = vector.load %arg1[%c0_3, %c0_4] : memref<16x16xf32, #tpu.memory_space<vmem>>, vector<16x16xf32>
    %cst_5 = arith.constant dense<0.000000e+00> : vector<16x32xf32>
    %9 = tpu.matmul %8, %7, %cst_5 {dimension_numbers = #tpu.dot_dimension_numbers<[1], [0], [0], [1], [0, 0, 1, 1], [], []>} : vector<16x16xf32>, vector<16x32xf32>, vector<16x32xf32> -> vector<16x32xf32>
    %cst_6 = arith.constant 0.000000e+00 : f32
    %10 = vector.broadcast %cst_6 : f32 to vector<16x32xf32>
    %11 = arith.maximumf %9, %10 : vector<16x32xf32>
    %cst_7 = arith.constant dense<0.000000e+00> : vector<16x32xf32>
    %12 = tpu.matmul %8, %11, %cst_7 {dimension_numbers = #tpu.dot_dimension_numbers<[1], [0], [0], [1], [0, 0, 1, 1], [], []>} : vector<16x16xf32>, vector<16x32xf32>, vector<16x32xf32> -> vector<16x32xf32>
    %c0_8 = arith.constant 0 : index
    %c0_9 = arith.constant 0 : index
    %13 = vector.load %arg3[%c0_8, %c0_9] : memref<32x16xf32, #tpu.memory_space<vmem>>, vector<32x16xf32>
    %cst_10 = arith.constant dense<0.000000e+00> : vector<16x16xf32>
    %14 = tpu.matmul %12, %13, %cst_10 {dimension_numbers = #tpu.dot_dimension_numbers<[1], [0], [0], [1], [0, 0, 1, 1], [], []>} : vector<16x32xf32>, vector<32x16xf32>, vector<16x16xf32> -> vector<16x16xf32>
    %c0_11 = arith.constant 0 : index
    %c0_12 = arith.constant 0 : index
    %15 = vector.load %arg4[%c0_11, %c0_12] : memref<16x16xf32, #tpu.memory_space<vmem>>, vector<16x16xf32>
    tpu.vector_store %arg4[%c0_11, %c0_12], %14 {strides = array<i32>} : memref<16x16xf32, #tpu.memory_space<vmem>>, vector<16x16xf32>,
    return
  }
}

</mosaic_0001>

<bundles_post_ra>
// kernel: gcn_forward.1
= control target key start
LH: loop header
LB: loop body
LE: loop exit
PB: predicated region body
PF: predicated region fallthrough
CT: control target
= control target key end

     0   :  { %v570_v2 = vmov 0   ;;  %s690_s0 = inlined_call_operand.vmem [shape: s32[16,1], index: 0, kind: input, shape index: {}]   ;;  %s691_s1 = inlined_call_operand.vmem [shape: f32[16,16], index: 1, kind: input, shape index: {}]   ;;  %s692_s2 = inlined_call_operand.vmem [shape: f32[128,32], index: 2, kind: input, shape index: {}]   ;;  %s693_s3 = inlined_call_operand.vmem [shape: f32[32,16], index: 3, kind: input, shape index: {}]   ;;  %s694_s4 = inlined_call_operand.hbm [shape: f32[16,16], index: 4, kind: output, shape index: {}]  }
   0x1   :  { %v18_v0 = vld [vmem:[%s690_s0] sm:$0xff]  ;;  %545 = vset.pattern.permute.xlu0 %v570_v2  ;;  %v35_v3 = vld [vmem:[%s692_s2 + $0x8] sm:$0xff]  ;;  %v36_v4 = vld [vmem:[%s692_s2 + $0x10] sm:$0xff] }
   0x2   :  { %v34_v1 = vld [vmem:[%s692_s2] sm:$0xff]  ;;  %v37_v5 = vld [vmem:[%s692_s2 + $0x18] sm:$0xff]  ;;  %23 = vperm.xlu0 %545, %v18_v0   ;;  %v19_v8 = vld [vmem:[%s690_s0 + $0x8] sm:$0xff] }
   0x3   :  { %v492_v6 = vpack.c.bf16 %v35_v3, %v34_v1  ;;  %v496_v7 = vpack.c.bf16 %v37_v5, %v36_v4  ;;  %v38_v9 = vld [vmem:[%s692_s2 + $0x20] sm:$0xff]  ;;  %v39_v10 = vld [vmem:[%s692_s2 + $0x28] sm:$0xff] }
   0x4   :  { %v500_v11 = vpack.c.bf16 %v39_v10, %v38_v9 }
   0x5   :  { %493 = vmatprep.subr.bf16.mxu0 %v492_v6 }
   0x6   :  { %495 = vmatpush3.bf16.msra.mxu0 %v492_v6  ;;  %26 = vperm.xlu0 %545, %v19_v8  }
   0x7   :  { %497 = vmatprep.subr.bf16.mxu0 %v496_v7 }
   0x8   :  { %9 = vsyncpa [#allocation3], 0  ;;  %v40_v12 = vld [vmem:[%s692_s2 + $0x30] sm:$0xff]  ;;  %v41_v13 = vld [vmem:[%s692_s2 + $0x38] sm:$0xff]  ;;  %v20_v27 = vlaneseq  ;;  %v571_v30 = vmov 1.0   ;;  %vm127_vm2 = vcmask 130048  }
   0x9   :  { %v504_v14 = vpack.c.bf16 %v41_v13, %v40_v12  ;;  %v42_v15 = vld [vmem:[%s692_s2 + $0x40] sm:$0xff]  ;;  %v43_v16 = vld [vmem:[%s692_s2 + $0x48] sm:$0xff]  ;;  %v44_v18 = vld [vmem:[%s692_s2 + $0x50] sm:$0xff]  ;;  %vm290_vm3 = vcmask 261120   ;;  %s572_s0 = smov [#allocation2]  }
   0xa   :  { %499 = vmatpush3.bf16.msra.mxu0 %v496_v7  ;;  %v508_v17 = vpack.c.bf16 %v43_v16, %v42_v15  ;;  %v45_v19 = vld [vmem:[%s692_s2 + $0x58] sm:$0xff]  ;;  %v46_v21 = vld [vmem:[%s692_s2 + $0x60] sm:$0xff]  ;;  %v47_v22 = vld [vmem:[%s692_s2 + $0x68] sm:$0xff]  ;;  %v21_v28 = vand.u32 127, %v20_v27  ;;  %s379_s8 = sshll.u32 %s572_s0, 4  ;;  %s380_s8 = int_to_ptr.vmem [resolvable:$true] %s379_s8 }
   0xb   :  { %501 = vmatprep.subr.bf16.mxu0 %v500_v11  ;;  %v512_v20 = vpack.c.bf16 %v45_v19, %v44_v18  ;;  %v516_v23 = vpack.c.bf16 %v47_v22, %v46_v21  ;;  %v48_v24 = vld [vmem:[%s692_s2 + $0x70] sm:$0xff]  ;;  %v49_v25 = vld [vmem:[%s692_s2 + $0x78] sm:$0xff]  ;;  %v125_v32 = vld [vmem:[%s691_s1] sm:$0xff]  ;;  %p551_p1 = scmp.lt.s32.totalorder %s380_s8, %s380_s8 }
   0xc   :  { %v520_v26 = vpack.c.bf16 %v49_v25, %v48_v24  ;;  %471 = vmatprep.mubr.msk.f32.mxu1 %vm127_vm2, %v125_v32  ;;  %v126_v36 = vld [vmem:[%s691_s1 + $0x8] sm:$0xff]  ;;  %v286_v40 = vld [vmem:[%s693_s3] sm:$0xff]  ;;  %v288_v45 = vld [vmem:[%s693_s3 + $0x10] sm:$0xff] }
   0xd   :  { %v287_v41 = vld [vmem:[%s693_s3 + $0x8] sm:$0xff]  ;;  %v289_v46 = vld [vmem:[%s693_s3 + $0x18] sm:$0xff]  ;;  %s546_s3 = scalar_lea.vmem %s380_s8, 256 }
   0xe   :  { %503 = vmatpush3.bf16.msra.mxu0 %v500_v11  ;;  %v532_v44 = vpack.c.bf16 %v287_v41, %v286_v40  ;;  %v536_v47 = vpack.c.bf16 %v289_v46, %v288_v45  ;;  %p547_p0 = scmp.ne.s32.totalorder %s380_s8, %s546_s3  ;;  %p552_p2 = scmp.lt.s32.totalorder %s546_s3, %s546_s3 }
   0xf   :  { %505 = vmatprep.subr.bf16.mxu0 %v504_v14 }
  0x10   :  { %p553_p3 = por %p552_p2, %p551_p1 }
  0x12   :  { %507 = vmatpush3.bf16.msra.mxu0 %v504_v14  ;;  %p554_p4 = pnand %p553_p3, %p547_p0 }
  0x13   :  { %509 = vmatprep.subr.bf16.mxu0 %v508_v17 }
  0x16   :  { %511 = vmatpush3.bf16.msra.mxu0 %v508_v17 }
  0x17   :  { %513 = vmatprep.subr.bf16.mxu0 %v512_v20 }
  0x1a   :  { %515 = vmatpush3.bf16.msra.mxu0 %v512_v20 }
  0x1b   :  { %517 = vmatprep.subr.bf16.mxu0 %v516_v23 }
  0x1e   :  { %519 = vmatpush3.bf16.msra.mxu0 %v516_v23 }
  0x1f   :  { %521 = vmatprep.subr.bf16.mxu0 %v520_v26 }
  0x22   :  { %523 = vmatpush3.bf16.msra.mxu0 %v520_v26 }
  0x81   :  { %v24_v29 = vpop.permute.xlu0 %23 }
  0x82   :  { %vm28_vm0 = vcmp.eq.s32.totalorder %v21_v28, %v24_v29 }
  0x83   :  { %464 = vmatprep.mubr.msk.f32.mxu0 %vm28_vm0, %v571_v30 }
  0x85   :  { %v27_v31 = vpop.permute.xlu0 %26 }
  0x86   :  { %vm29_vm1 = vcmp.eq.s32.totalorder %v21_v28, %v27_v31 }
  0x87   :  { %465 = vmatmul.mubr.msk.f32.vlgmr.msra.gmra.mrb[0].mxu0 %vm29_vm1, %v571_v30 }
 0x15a   :  { %v466_v33 = vpop.f32.mrb[0].mxu0 }
 0x15b   :  { %v116_v34 = vpop.f32.mrb[1].mxu0 }
 0x15c   :  { %v524_v35 = vpack.c.bf16 %v466_v33, %v116_v34 }
 0x15e   :  { %525 = vmatprep.subr.bf16.mxu1 %v524_v35 }
 0x15f   :  { %527 = vmatpush3.bf16.msra.mxu1 %v524_v35 }
 0x162   :  { %472 = vmatmul.mubr.msk.f32.vlgmr.msra.gmra.mrb[0].mxu1 %vm127_vm2, %v126_v36 }
 0x163   :  { %478 = vmatprep.mubr.msk.f32.mxu1 %vm127_vm2, %v125_v32 }
 0x235   :  { %v473_v37 = vpop.f32.mrb[0].mxu1 }
 0x236   :  { %v210_v38 = vmax.f32 %v473_v37, 0.0  ;;  %v200_v39 = vpop.f32.mrb[1].mxu1 }
 0x237   :  { %v209_v42 = vmax.f32 %v200_v39, 0.0 }
 0x239   :  { %v528_v43 = vpack.c.bf16 %v210_v38, %v209_v42 }
 0x23b   :  { %529 = vmatprep.subr.bf16.mxu1 %v528_v43 }
 0x23c   :  { %531 = vmatpush3.bf16.msra.mxu1 %v528_v43 }
 0x23d   :  { %533 = vmatprep.subr.bf16.mxu1 %v532_v44 }
 0x23f   :  { %479 = vmatmul.mubr.msk.f32.vlgmr.msra.gmra.mrb[2].mxu1 %vm127_vm2, %v126_v36 }
 0x240   :  { %535 = vmatpush3.bf16.msra.mxu1 %v532_v44 }
 0x241   :  { %537 = vmatprep.subr.bf16.mxu1 %v536_v47 }
 0x244   :  { %539 = vmatpush3.bf16.msra.mxu1 %v536_v47 }
 0x312   :  { %v480_v48 = vpop.f32.mrb[2].mxu1 }
 0x313   :  { %v277_v49 = vpop.f32.mrb[3].mxu1 }
 0x314   :  { %489 = vmatprep.mubr.msk.f32.mxu1 %vm290_vm3, %v277_v49 }
 0x315   :  { %490 = vmatmul.mubr.msk.f32.vlgmr.msra.gmra.mrb[4].mxu1 %vm290_vm3, %v480_v48 }
 0x3e8   :  { %v491_v50 = vpop.f32.mrb[4].mxu1 }
 0x3e9   :  { %373 = vst.msk [vmem:[#allocation2 + $0x8] sm:$0xff] %vm127_vm2, %v491_v50  ;;  %v363_v51 = vpop.f32.mrb[5].mxu1 }
 0x3ea   :  { %372 = vst.msk [vmem:[#allocation2] sm:$0xff] %vm127_vm2, %v363_v51 }
 0x3eb   :  { %557 = shalt.err (!%p554_p4)
}
 0x3ec   :  { %s558_s11 = scalar_lea.hbm %s694_s4, 256 }
 0x3ed   :  { %p559_p5 = scmp.ne.s32.totalorder %s694_s4, %s558_s11  ;;  %p562_p6 = scmp.lt.u32.totalorder %s558_s11, %s694_s4 }
 0x3ef   :  { %p564_p7 = pnand %p562_p6, %p559_p5 }
 0x3f1   :  { %567 = shalt.err (!%p564_p7)
}
 0x3f2   :  { %s573_s16 = smov 128   ;;  %s574_s17 = smov 8  }
 0x3f3   :  { %385 = dma.vmem_to_hbm [thread:$0]  %s380_s8, 256, %s694_s4, [#allocation3], %s573_s16, %s573_s16, %s574_s17  }
 0x3f4   :  { %568 = dma.done.wait [#allocation3], 256  }
 0x3f5   :  { %569 = vsyncadd [#allocation3], 4294967040 }
 0x3f6   :  { %389 = vsyncpa [#allocation3], 1 }

</bundles_post_ra>
